<compile_context>
chip_gen: v7x
topology: tpu7x:2x2x1
jax: 0.10.0
libtpu: 0.0.40
codegen_flags: <defaults>
</compile_context>

<pallas_src>
import jax
import jax.numpy as jnp
from jax.experimental import pallas as pl
from jax.experimental.pallas import tpu as pltpu


# ----------------------------- helpers -----------------------------

def _round_up(n, m):
    return ((n + m - 1) // m) * m


def _pad_to(a, shape):
    pads = [(0, t - s) for s, t in zip(a.shape, shape)]
    if all(p == (0, 0) for p in pads):
        return a
    return jnp.pad(a, pads)


def _choose_batch_tile(B, batch_tile):
    """MXU-friendly batch tiles; always >=2 grid steps when the batch allows it."""
    if B > batch_tile:
        step = 256 if batch_tile >= 256 else 8
        return max(step, (batch_tile // step) * step)
    if B >= 32:
        return _round_up(pl.cdiv(B, 4), 8)   # >= 4 tiles (v7x megacore + pipelining)
    if B >= 16:
        return _round_up(pl.cdiv(B, 2), 8)   # 2 tiles
    return B                                  # tiny batch: single full-extent block


# ----------------------------- kernel ------------------------------

def vae_kernel(
    x_ref, eps_ref,
    w1_ref, b1_ref,        # encoder fc1        (bf16 weight, f32 bias)
    whead_ref, bhead_ref,  # fused, lane-padded [fcmu | fcsigma] heads
    dw1_ref, db1_ref,      # decoder fc1
    dw2_ref, db2_ref,      # decoder fc2
    recon_ref, head_ref,   # outputs: reconstruction, packed [mu(Lp) | logsigma(Lp)]
):
    lp = eps_ref.shape[-1]   # padded latent width (multiple of 128)
    x = x_ref[...]

    # ---- Encoder fc1 + ReLU (bf16 MXU operands, f32 accumulate) ----
    h = jnp.dot(x.astype(jnp.bfloat16), w1_ref[...],
                preferred_element_type=jnp.float32) + b1_ref[...]
    h = jnp.maximum(h, 0.0)

    # ---- Fused encoder heads: one MXU pass producing [mu | logsigma], lane-dense ----
    head = jnp.dot(h.astype(jnp.bfloat16), whead_ref[...],
                   preferred_element_type=jnp.float32) + bhead_ref[...]
    mu = head[:, :lp]          # 128-aligned static slices: no lane rotate needed
    logsigma = head[:, lp:]

    # ---- Reparameterization (f32 elementwise): z = eps * exp(logsigma/2) + mu ----
    # Padded latent lanes: eps=0, mu=0, logsigma=0 -> z=0, so they contribute nothing.
    z = eps_ref[...] * jnp.exp(logsigma * 0.5) + mu

    # ---- Decoder ----
    hd = jnp.dot(z.astype(jnp.bfloat16), dw1_ref[...],
                 preferred_element_type=jnp.float32) + db1_ref[...]
    hd = jnp.maximum(hd, 0.0)
    logits = jnp.dot(hd.astype(jnp.bfloat16), dw2_ref[...],
                     preferred_element_type=jnp.float32) + db2_ref[...]
    # Sigmoid with a single transcendental (tanh) instead of exp + reciprocal.
    recon = 0.5 * jnp.tanh(0.5 * logits) + 0.5

    recon_ref[...] = recon.astype(recon_ref.dtype)
    head_ref[...] = head.astype(head_ref.dtype)


# ----------------------------- wrapper -----------------------------

def vae_forward(x, eps, params, *, batch_tile=512):
    """x: (B, D) f32, eps: (B, L) f32, params: dict of f32 weights/biases."""
    B, D = x.shape
    L = eps.shape[1]
    H = params["w1"].shape[1]

    Dp = _round_up(D, 128)   # lane-dense input / reconstruction width (unmasked stores)
    Lp = _round_up(L, 128)   # lane-dense per-head width

    # ---- Weight prep: pad to lane-dense shapes, fuse heads, cast MXU operands to bf16 ----
    w1 = _pad_to(params["w1"], (Dp, H)).astype(jnp.bfloat16)
    b1 = params["b1"]
    whead = jnp.concatenate(
        [_pad_to(params["wmu"], (H, Lp)), _pad_to(params["wsig"], (H, Lp))],
        axis=1).astype(jnp.bfloat16)                                   # (H, 2*Lp)
    bhead = jnp.concatenate(
        [_pad_to(params["bmu"], (1, Lp)), _pad_to(params["bsig"], (1, Lp))], axis=1)
    dw1 = _pad_to(params["dw1"], (Lp, H)).astype(jnp.bfloat16)          # zero pad rows
    db1 = params["db1"]
    dw2 = _pad_to(params["dw2"], (H, Dp)).astype(jnp.bfloat16)          # zero pad cols
    db2 = _pad_to(params["db2"], (1, Dp))
    weights = (w1, b1, whead, bhead, dw1, db1, dw2, db2)

    # ---- Batch tiling ----
    bt = _choose_batch_tile(B, batch_tile)
    Bp = _round_up(B, bt)
    grid = (Bp // bt,)

    x_p = _pad_to(x, (Bp, Dp))
    eps_p = _pad_to(eps, (Bp, Lp))

    def act_spec(n):
        return pl.BlockSpec((bt, n), lambda i: (i, 0))

    def resident_spec(arr, single_buffer):
        # Constant-index (resident) weights: single-buffered to halve VMEM footprint.
        if single_buffer:
            return pl.BlockSpec(arr.shape, lambda i: (0, 0),
                                pipeline_mode=pl.Buffered(1))
        return pl.BlockSpec(arr.shape, lambda i: (0, 0))

    out_specs = (
        pl.BlockSpec((bt, Dp), lambda i: (i, 0)),
        pl.BlockSpec((bt, 2 * Lp), lambda i: (i, 0)),
    )
    out_shapes = (
        jax.ShapeDtypeStruct((Bp, Dp), jnp.float32),       # reconstruction (padded)
        jax.ShapeDtypeStruct((Bp, 2 * Lp), jnp.float32),   # packed [mu | logsigma] (padded)
    )

    # Advisory cost estimate so XLA can overlap surrounding ops with this call.
    flops = 2 * Bp * (Dp * H + H * 2 * Lp + Lp * H + H * Dp)
    transcendentals = Bp * (Lp + Dp)                         # exp in reparam + tanh sigmoid
    weight_bytes = sum(int(w.size) * w.dtype.itemsize for w in weights)
    io_bytes = 4 * Bp * (Dp + Lp + Dp + 2 * Lp)
    cost = pl.CostEstimate(flops=flops, transcendentals=transcendentals,
                           bytes_accessed=weight_bytes + io_bytes)

    # Explicit VMEM budget: double-buffered activations + resident weights, ~2x headroom,
    # capped at 64 MiB (v7x physical VMEM).
    act_bytes = 2 * 4 * bt * (Dp + Lp + Dp + 2 * Lp)
    vmem_limit = int(min(64 << 20, max(32 << 20, 2 * (act_bytes + weight_bytes))))

    def run(single_buffer_weights):
        in_specs = [act_spec(Dp), act_spec(Lp)] + [
            resident_spec(w, single_buffer_weights) for w in weights]
        return pl.pallas_call(
            vae_kernel,
            out_shape=out_shapes,
            grid=grid,
            in_specs=in_specs,
            out_specs=out_specs,
            compiler_params=pltpu.CompilerParams(
                dimension_semantics=("parallel",),
                vmem_limit_bytes=vmem_limit),
            cost_estimate=cost,
        )(x_p, eps_p, *weights)

    try:
        recon_p, head_p = run(single_buffer_weights=True)
    except Exception:
        # Fallback for jax versions without BlockSpec pipeline_mode / pl.Buffered(1):
        # identical kernel, default double-buffered resident weights.
        recon_p, head_p = run(single_buffer_weights=False)

    recon = recon_p[:B, :D]
    mu = head_p[:B, :L]
    logsigma = head_p[:B, Lp:Lp + L]
    return recon, mu, logsigma


# ----------------------------- init & reference -----------------------------

def init_linear(key, fan_in, fan_out):
    """Deterministic init mimicking torch.nn.Linear (uniform +-1/sqrt(fan_in)).

    Weight returned pre-transposed to (fan_in, fan_out); bias as (1, fan_out).
    """
    kw, kb = jax.random.split(key)
    bound = 1.0 / jnp.sqrt(fan_in)
    w = jax.random.uniform(kw, (fan_in, fan_out), jnp.float32, -bound, bound)
    b = jax.random.uniform(kb, (1, fan_out), jnp.float32, -bound, bound)
    return w, b


def init_vae_params(key, latent_dim, original_dim, hidden_dim):
    keys = jax.random.split(key, 5)
    w1, b1 = init_linear(keys[0], original_dim, hidden_dim)     # encoder.fc1
    wmu, bmu = init_linear(keys[1], hidden_dim, latent_dim)     # encoder.fcmu
    wsig, bsig = init_linear(keys[2], hidden_dim, latent_dim)   # encoder.fcsigma
    dw1, db1 = init_linear(keys[3], latent_dim, hidden_dim)     # decoder.fc1
    dw2, db2 = init_linear(keys[4], hidden_dim, original_dim)   # decoder.fc2
    return dict(w1=w1, b1=b1, wmu=wmu, bmu=bmu, wsig=wsig, bsig=bsig,
                dw1=dw1, db1=db1, dw2=dw2, db2=db2)


def vae_reference(x, eps, p):
    """Pure-JAX reference replicating the kernel's bf16-matmul / f32-accumulate scheme."""
    L = eps.shape[1]
    w1 = p["w1"].astype(jnp.bfloat16)
    whead = jnp.concatenate([p["wmu"], p["wsig"]], axis=1).astype(jnp.bfloat16)
    bhead = jnp.concatenate([p["bmu"], p["bsig"]], axis=1)
    dw1 = p["dw1"].astype(jnp.bfloat16)
    dw2 = p["dw2"].astype(jnp.bfloat16)

    h = jnp.maximum(
        jnp.dot(x.astype(jnp.bfloat16), w1, preferred_element_type=jnp.float32) + p["b1"], 0.0)
    head = jnp.dot(h.astype(jnp.bfloat16), whead, preferred_element_type=jnp.float32) + bhead
    mu, logsigma = head[:, :L], head[:, L:]
    z = eps * jnp.exp(logsigma * 0.5) + mu
    hd = jnp.maximum(
        jnp.dot(z.astype(jnp.bfloat16), dw1, preferred_element_type=jnp.float32) + p["db1"], 0.0)
    recon = jax.nn.sigmoid(
        jnp.dot(hd.astype(jnp.bfloat16), dw2, preferred_element_type=jnp.float32) + p["db2"])
    return recon, mu, logsigma


def _check(batch, original_dim, hidden_dim, latent_dim, seed):
    key = jax.random.PRNGKey(seed)
    k_x, k_eps, k_params = jax.random.split(key, 3)
    x = jax.random.uniform(k_x, (batch, original_dim), jnp.float32)     # pixel-like inputs in [0,1)
    eps = jax.random.normal(k_eps, (batch, latent_dim), jnp.float32)    # torch.randn equivalent
    params = init_vae_params(k_params, latent_dim, original_dim, hidden_dim)

    recon, mu, logsigma = jax.block_until_ready(vae_forward(x, eps, params))

    r_ref, mu_ref, ls_ref = vae_reference(x, eps, params)
    assert recon.shape == (batch, original_dim)
    assert mu.shape == (batch, latent_dim) and logsigma.shape == (batch, latent_dim)
    assert jnp.allclose(mu, mu_ref, atol=2e-2), "mu mismatch"
    assert jnp.allclose(logsigma, ls_ref, atol=2e-2), "logsigma mismatch"
    assert jnp.allclose(recon, r_ref, atol=2e-2), "reconstruction mismatch"


if __name__ == "__main__":
    # Small shapes consistent with the module: flattened inputs of size original_dim.
    # 1) Aligned shapes, single tile.
    _check(batch=8, original_dim=128, hidden_dim=64, latent_dim=16, seed=0)
    # 2) Non-128 original/latent dims + multi-step grid (exercises lane padding + 2 tiles).
    _check(batch=20, original_dim=200, hidden_dim=64, latent_dim=10, seed=0)

    print("KERNEL_OK")
</pallas_src>

<mosaic_0001>
module attributes {stable_mosaic.version = 11 : i64} {
  func.func @vae_kernel(%arg0: i32, %arg1: memref<8x128xf32, #tpu.memory_space<vmem>>, %arg2: memref<8x128xf32, #tpu.memory_space<vmem>>, %arg3: memref<128x64xbf16, #tpu.memory_space<vmem>>, %arg4: memref<1x64xf32, #tpu.memory_space<vmem>>, %arg5: memref<64x256xbf16, #tpu.memory_space<vmem>>, %arg6: memref<1x256xf32, #tpu.memory_space<vmem>>, %arg7: memref<128x64xbf16, #tpu.memory_space<vmem>>, %arg8: memref<1x64xf32, #tpu.memory_space<vmem>>, %arg9: memref<64x128xbf16, #tpu.memory_space<vmem>>, %arg10: memref<1x128xf32, #tpu.memory_space<vmem>>, %arg11: memref<8x128xf32, #tpu.memory_space<vmem>>, %arg12: memref<8x256xf32, #tpu.memory_space<vmem>>) attributes {dimension_semantics = [#tpu.dimension_semantics<parallel>], iteration_bounds = array<i64: 1>, scalar_prefetch = 0 : i64, scratch_operands = 0 : i64, tpu.core_type = #tpu.core_type<tc>, window_params = [{transform_indices = @transform_0, window_bounds = array<i64: 8, 128>}, {transform_indices = @transform_1, window_bounds = array<i64: 8, 128>}, {pipeline_mode = #tpu.pipeline_mode<synchronous>, transform_indices = @transform_2, window_bounds = array<i64: 128, 64>}, {pipeline_mode = #tpu.pipeline_mode<synchronous>, transform_indices = @transform_3, window_bounds = array<i64: 1, 64>}, {pipeline_mode = #tpu.pipeline_mode<synchronous>, transform_indices = @transform_4, window_bounds = array<i64: 64, 256>}, {pipeline_mode = #tpu.pipeline_mode<synchronous>, transform_indices = @transform_5, window_bounds = array<i64: 1, 256>}, {pipeline_mode = #tpu.pipeline_mode<synchronous>, transform_indices = @transform_6, window_bounds = array<i64: 128, 64>}, {pipeline_mode = #tpu.pipeline_mode<synchronous>, transform_indices = @transform_7, window_bounds = array<i64: 1, 64>}, {pipeline_mode = #tpu.pipeline_mode<synchronous>, transform_indices = @transform_8, window_bounds = array<i64: 64, 128>}, {pipeline_mode = #tpu.pipeline_mode<synchronous>, transform_indices = @transform_9, window_bounds = array<i64: 1, 128>}, {transform_indices = @transform_10, window_bounds = array<i64: 8, 128>}, {transform_indices = @transform_11, window_bounds = array<i64: 8, 256>}]} {
    %c0 = arith.constant 0 : index
    %c0_0 = arith.constant 0 : index
    %0 = vector.load %arg1[%c0, %c0_0] : memref<8x128xf32, #tpu.memory_space<vmem>>, vector<8x128xf32>
    %1 = arith.truncf %0 : vector<8x128xf32> to vector<8x128xbf16>
    %c0_1 = arith.constant 0 : index
    %c0_2 = arith.constant 0 : index
    %2 = vector.load %arg3[%c0_1, %c0_2] : memref<128x64xbf16, #tpu.memory_space<vmem>>, vector<128x64xbf16>
    %cst = arith.constant dense<0.000000e+00> : vector<8x64xf32>
    %3 = tpu.matmul %1, %2, %cst {dimension_numbers = #tpu.dot_dimension_numbers<[1], [0], [0], [1], [0, 0, 1, 1], [], []>} : vector<8x128xbf16>, vector<128x64xbf16>, vector<8x64xf32> -> vector<8x64xf32>
    %c0_3 = arith.constant 0 : index
    %c0_4 = arith.constant 0 : index
    %4 = vector.load %arg4[%c0_3, %c0_4] : memref<1x64xf32, #tpu.memory_space<vmem>>, vector<1x64xf32>
    %5 = vector.broadcast %4 : vector<1x64xf32> to vector<8x64xf32>
    %6 = arith.addf %3, %5 : vector<8x64xf32>
    %cst_5 = arith.constant 0.000000e+00 : f32
    %7 = vector.broadcast %cst_5 : f32 to vector<8x64xf32>
    %8 = arith.maximumf %6, %7 : vector<8x64xf32>
    %9 = arith.truncf %8 : vector<8x64xf32> to vector<8x64xbf16>
    %c0_6 = arith.constant 0 : index
    %c0_7 = arith.constant 0 : index
    %10 = vector.load %arg5[%c0_6, %c0_7] : memref<64x256xbf16, #tpu.memory_space<vmem>>, vector<64x256xbf16>
    %cst_8 = arith.constant dense<0.000000e+00> : vector<8x256xf32>
    %11 = tpu.matmul %9, %10, %cst_8 {dimension_numbers = #tpu.dot_dimension_numbers<[1], [0], [0], [1], [0, 0, 1, 1], [], []>} : vector<8x64xbf16>, vector<64x256xbf16>, vector<8x256xf32> -> vector<8x256xf32>
    %c0_9 = arith.constant 0 : index
    %c0_10 = arith.constant 0 : index
    %12 = vector.load %arg6[%c0_9, %c0_10] : memref<1x256xf32, #tpu.memory_space<vmem>>, vector<1x256xf32>
    %13 = vector.broadcast %12 : vector<1x256xf32> to vector<8x256xf32>
    %14 = arith.addf %11, %13 : vector<8x256xf32>
    %15 = vector.extract_strided_slice %14 {offsets = [0, 0], sizes = [8, 128], strides = [1, 1]} : vector<8x256xf32> to vector<8x128xf32>
    %16 = vector.extract_strided_slice %14 {offsets = [0, 128], sizes = [8, 128], strides = [1, 1]} : vector<8x256xf32> to vector<8x128xf32>
    %c0_11 = arith.constant 0 : index
    %c0_12 = arith.constant 0 : index
    %17 = vector.load %arg2[%c0_11, %c0_12] : memref<8x128xf32, #tpu.memory_space<vmem>>, vector<8x128xf32>
    %cst_13 = arith.constant 5.000000e-01 : f32
    %18 = vector.broadcast %cst_13 : f32 to vector<8x128xf32>
    %19 = arith.mulf %16, %18 : vector<8x128xf32>
    %20 = math.exp %19 : vector<8x128xf32>
    %21 = arith.mulf %17, %20 : vector<8x128xf32>
    %22 = arith.addf %21, %15 : vector<8x128xf32>
    %23 = arith.truncf %22 : vector<8x128xf32> to vector<8x128xbf16>
    %c0_14 = arith.constant 0 : index
    %c0_15 = arith.constant 0 : index
    %24 = vector.load %arg7[%c0_14, %c0_15] : memref<128x64xbf16, #tpu.memory_space<vmem>>, vector<128x64xbf16>
    %cst_16 = arith.constant dense<0.000000e+00> : vector<8x64xf32>
    %25 = tpu.matmul %23, %24, %cst_16 {dimension_numbers = #tpu.dot_dimension_numbers<[1], [0], [0], [1], [0, 0, 1, 1], [], []>} : vector<8x128xbf16>, vector<128x64xbf16>, vector<8x64xf32> -> vector<8x64xf32>
    %c0_17 = arith.constant 0 : index
    %c0_18 = arith.constant 0 : index
    %26 = vector.load %arg8[%c0_17, %c0_18] : memref<1x64xf32, #tpu.memory_space<vmem>>, vector<1x64xf32>
    %27 = vector.broadcast %26 : vector<1x64xf32> to vector<8x64xf32>
    %28 = arith.addf %25, %27 : vector<8x64xf32>
    %cst_19 = arith.constant 0.000000e+00 : f32
    %29 = vector.broadcast %cst_19 : f32 to vector<8x64xf32>
    %30 = arith.maximumf %28, %29 : vector<8x64xf32>
    %31 = arith.truncf %30 : vector<8x64xf32> to vector<8x64xbf16>
    %c0_20 = arith.constant 0 : index
    %c0_21 = arith.constant 0 : index
    %32 = vector.load %arg9[%c0_20, %c0_21] : memref<64x128xbf16, #tpu.memory_space<vmem>>, vector<64x128xbf16>
    %cst_22 = arith.constant dense<0.000000e+00> : vector<8x128xf32>
    %33 = tpu.matmul %31, %32, %cst_22 {dimension_numbers = #tpu.dot_dimension_numbers<[1], [0], [0], [1], [0, 0, 1, 1], [], []>} : vector<8x64xbf16>, vector<64x128xbf16>, vector<8x128xf32> -> vector<8x128xf32>
    %c0_23 = arith.constant 0 : index
    %c0_24 = arith.constant 0 : index
    %34 = vector.load %arg10[%c0_23, %c0_24] : memref<1x128xf32, #tpu.memory_space<vmem>>, vector<1x128xf32>
    %35 = vector.broadcast %34 : vector<1x128xf32> to vector<8x128xf32>
    %36 = arith.addf %33, %35 : vector<8x128xf32>
    %cst_25 = arith.constant 5.000000e-01 : f32
    %37 = vector.broadcast %cst_25 : f32 to vector<8x128xf32>
    %38 = arith.mulf %37, %36 : vector<8x128xf32>
    %39 = math.tanh %38 : vector<8x128xf32>
    %cst_26 = arith.constant 5.000000e-01 : f32
    %40 = vector.broadcast %cst_26 : f32 to vector<8x128xf32>
    %41 = arith.mulf %40, %39 : vector<8x128xf32>
    %cst_27 = arith.constant 5.000000e-01 : f32
    %42 = vector.broadcast %cst_27 : f32 to vector<8x128xf32>
    %43 = arith.addf %41, %42 : vector<8x128xf32>
    %c0_28 = arith.constant 0 : index
    %c0_29 = arith.constant 0 : index
    %44 = vector.load %arg11[%c0_28, %c0_29] : memref<8x128xf32, #tpu.memory_space<vmem>>, vector<8x128xf32>
    tpu.vector_store %arg11[%c0_28, %c0_29], %43 {strides = array<i32>} : memref<8x128xf32, #tpu.memory_space<vmem>>, vector<8x128xf32>,
    %c0_30 = arith.constant 0 : index
    %c0_31 = arith.constant 0 : index
    %45 = vector.load %arg12[%c0_30, %c0_31] : memref<8x256xf32, #tpu.memory_space<vmem>>, vector<8x256xf32>
    tpu.vector_store %arg12[%c0_30, %c0_31], %14 {strides = array<i32>} : memref<8x256xf32, #tpu.memory_space<vmem>>, vector<8x256xf32>,
    return
  }
  func.func @transform_0(%arg0: i32) -> (i32, i32) {
    %c0_i32 = arith.constant 0 : i32
    %c0_i32_0 = arith.constant 0 : i32
    return %arg0, %c0_i32 : i32, i32
  }
  func.func @transform_1(%arg0: i32) -> (i32, i32) {
    %c0_i32 = arith.constant 0 : i32
    %c0_i32_0 = arith.constant 0 : i32
    return %arg0, %c0_i32 : i32, i32
  }
  func.func @transform_2(%arg0: i32) -> (i32, i32) {
    %c0_i32 = arith.constant 0 : i32
    %c0_i32_0 = arith.constant 0 : i32
    %c0_i32_1 = arith.constant 0 : i32
    return %c0_i32, %c0_i32_0 : i32, i32
  }
  func.func @transform_3(%arg0: i32) -> (i32, i32) {
    %c0_i32 = arith.constant 0 : i32
    %c0_i32_0 = arith.constant 0 : i32
    %c0_i32_1 = arith.constant 0 : i32
    return %c0_i32, %c0_i32_0 : i32, i32
  }
  func.func @transform_4(%arg0: i32) -> (i32, i32) {
    %c0_i32 = arith.constant 0 : i32
    %c0_i32_0 = arith.constant 0 : i32
    %c0_i32_1 = arith.constant 0 : i32
    return %c0_i32, %c0_i32_0 : i32, i32
  }
  func.func @transform_5(%arg0: i32) -> (i32, i32) {
    %c0_i32 = arith.constant 0 : i32
    %c0_i32_0 = arith.constant 0 : i32
    %c0_i32_1 = arith.constant 0 : i32
    return %c0_i32, %c0_i32_0 : i32, i32
  }
  func.func @transform_6(%arg0: i32) -> (i32, i32) {
    %c0_i32 = arith.constant 0 : i32
    %c0_i32_0 = arith.constant 0 : i32
    %c0_i32_1 = arith.constant 0 : i32
    return %c0_i32, %c0_i32_0 : i32, i32
  }
  func.func @transform_7(%arg0: i32) -> (i32, i32) {
    %c0_i32 = arith.constant 0 : i32
    %c0_i32_0 = arith.constant 0 : i32
    %c0_i32_1 = arith.constant 0 : i32
    return %c0_i32, %c0_i32_0 : i32, i32
  }
  func.func @transform_8(%arg0: i32) -> (i32, i32) {
    %c0_i32 = arith.constant 0 : i32
    %c0_i32_0 = arith.constant 0 : i32
    %c0_i32_1 = arith.constant 0 : i32
    return %c0_i32, %c0_i32_0 : i32, i32
  }
  func.func @transform_9(%arg0: i32) -> (i32, i32) {
    %c0_i32 = arith.constant 0 : i32
    %c0_i32_0 = arith.constant 0 : i32
    %c0_i32_1 = arith.constant 0 : i32
    return %c0_i32, %c0_i32_0 : i32, i32
  }
  func.func @transform_10(%arg0: i32) -> (i32, i32) {
    %c0_i32 = arith.constant 0 : i32
    %c0_i32_0 = arith.constant 0 : i32
    return %arg0, %c0_i32 : i32, i32
  }
  func.func @transform_11(%arg0: i32) -> (i32, i32) {
    %c0_i32 = arith.constant 0 : i32
    %c0_i32_0 = arith.constant 0 : i32
    return %arg0, %c0_i32 : i32, i32
  }
}

module attributes {stable_mosaic.version = 11 : i64} {
  func.func @vae_kernel(%arg0: i32, %arg1: memref<8x128xf32, #tpu.memory_space<vmem>>, %arg2: memref<8x128xf32, #tpu.memory_space<vmem>>, %arg3: memref<128x64xbf16, #tpu.memory_space<vmem>>, %arg4: memref<1x64xf32, #tpu.memory_space<vmem>>, %arg5: memref<64x256xbf16, #tpu.memory_space<vmem>>, %arg6: memref<1x256xf32, #tpu.memory_space<vmem>>, %arg7: memref<128x64xbf16, #tpu.memory_space<vmem>>, %arg8: memref<1x64xf32, #tpu.memory_space<vmem>>, %arg9: memref<64x128xbf16, #tpu.memory_space<vmem>>, %arg10: memref<1x128xf32, #tpu.memory_space<vmem>>, %arg11: memref<8x128xf32, #tpu.memory_space<vmem>>, %arg12: memref<8x256xf32, #tpu.memory_space<vmem>>) attributes {dimension_semantics = [#tpu.dimension_semantics<parallel>], iteration_bounds = array<i64: 1>, scalar_prefetch = 0 : i64, scratch_operands = 0 : i64, tpu.core_type = #tpu.core_type<tc>, window_params = [{transform_indices = @transform_0, window_bounds = array<i64: 8, 128>}, {transform_indices = @transform_1, window_bounds = array<i64: 8, 128>}, {pipeline_mode = #tpu.pipeline_mode<synchronous>, transform_indices = @transform_2, window_bounds = array<i64: 128, 64>}, {pipeline_mode = #tpu.pipeline_mode<synchronous>, transform_indices = @transform_3, window_bounds = array<i64: 1, 64>}, {pipeline_mode = #tpu.pipeline_mode<synchronous>, transform_indices = @transform_4, window_bounds = array<i64: 64, 256>}, {pipeline_mode = #tpu.pipeline_mode<synchronous>, transform_indices = @transform_5, window_bounds = array<i64: 1, 256>}, {pipeline_mode = #tpu.pipeline_mode<synchronous>, transform_indices = @transform_6, window_bounds = array<i64: 128, 64>}, {pipeline_mode = #tpu.pipeline_mode<synchronous>, transform_indices = @transform_7, window_bounds = array<i64: 1, 64>}, {pipeline_mode = #tpu.pipeline_mode<synchronous>, transform_indices = @transform_8, window_bounds = array<i64: 64, 128>}, {pipeline_mode = #tpu.pipeline_mode<synchronous>, transform_indices = @transform_9, window_bounds = array<i64: 1, 128>}, {transform_indices = @transform_10, window_bounds = array<i64: 8, 128>}, {transform_indices = @transform_11, window_bounds = array<i64: 8, 256>}]} {
    %c0 = arith.constant 0 : index
    %c0_0 = arith.constant 0 : index
    %0 = vector.load %arg1[%c0, %c0_0] : memref<8x128xf32, #tpu.memory_space<vmem>>, vector<8x128xf32>
    %1 = arith.truncf %0 : vector<8x128xf32> to vector<8x128xbf16>
    %c0_1 = arith.constant 0 : index
    %c0_2 = arith.constant 0 : index
    %2 = vector.load %arg3[%c0_1, %c0_2] : memref<128x64xbf16, #tpu.memory_space<vmem>>, vector<128x64xbf16>
    %cst = arith.constant dense<0.000000e+00> : vector<8x64xf32>
    %3 = tpu.matmul %1, %2, %cst {dimension_numbers = #tpu.dot_dimension_numbers<[1], [0], [0], [1], [0, 0, 1, 1], [], []>} : vector<8x128xbf16>, vector<128x64xbf16>, vector<8x64xf32> -> vector<8x64xf32>
    %c0_3 = arith.constant 0 : index
    %c0_4 = arith.constant 0 : index
    %4 = vector.load %arg4[%c0_3, %c0_4] : memref<1x64xf32, #tpu.memory_space<vmem>>, vector<1x64xf32>
    %5 = vector.broadcast %4 : vector<1x64xf32> to vector<8x64xf32>
    %6 = arith.addf %3, %5 : vector<8x64xf32>
    %cst_5 = arith.constant 0.000000e+00 : f32
    %7 = vector.broadcast %cst_5 : f32 to vector<8x64xf32>
    %8 = arith.maximumf %6, %7 : vector<8x64xf32>
    %9 = arith.truncf %8 : vector<8x64xf32> to vector<8x64xbf16>
    %c0_6 = arith.constant 0 : index
    %c0_7 = arith.constant 0 : index
    %10 = vector.load %arg5[%c0_6, %c0_7] : memref<64x256xbf16, #tpu.memory_space<vmem>>, vector<64x256xbf16>
    %cst_8 = arith.constant dense<0.000000e+00> : vector<8x256xf32>
    %11 = tpu.matmul %9, %10, %cst_8 {dimension_numbers = #tpu.dot_dimension_numbers<[1], [0], [0], [1], [0, 0, 1, 1], [], []>} : vector<8x64xbf16>, vector<64x256xbf16>, vector<8x256xf32> -> vector<8x256xf32>
    %c0_9 = arith.constant 0 : index
    %c0_10 = arith.constant 0 : index
    %12 = vector.load %arg6[%c0_9, %c0_10] : memref<1x256xf32, #tpu.memory_space<vmem>>, vector<1x256xf32>
    %13 = vector.broadcast %12 : vector<1x256xf32> to vector<8x256xf32>
    %14 = arith.addf %11, %13 : vector<8x256xf32>
    %15 = vector.extract_strided_slice %14 {offsets = [0, 0], sizes = [8, 128], strides = [1, 1]} : vector<8x256xf32> to vector<8x128xf32>
    %16 = vector.extract_strided_slice %14 {offsets = [0, 128], sizes = [8, 128], strides = [1, 1]} : vector<8x256xf32> to vector<8x128xf32>
    %c0_11 = arith.constant 0 : index
    %c0_12 = arith.constant 0 : index
    %17 = vector.load %arg2[%c0_11, %c0_12] : memref<8x128xf32, #tpu.memory_space<vmem>>, vector<8x128xf32>
    %cst_13 = arith.constant 5.000000e-01 : f32
    %18 = vector.broadcast %cst_13 : f32 to vector<8x128xf32>
    %19 = arith.mulf %16, %18 : vector<8x128xf32>
    %20 = math.exp %19 : vector<8x128xf32>
    %21 = arith.mulf %17, %20 : vector<8x128xf32>
    %22 = arith.addf %21, %15 : vector<8x128xf32>
    %23 = arith.truncf %22 : vector<8x128xf32> to vector<8x128xbf16>
    %c0_14 = arith.constant 0 : index
    %c0_15 = arith.constant 0 : index
    %24 = vector.load %arg7[%c0_14, %c0_15] : memref<128x64xbf16, #tpu.memory_space<vmem>>, vector<128x64xbf16>
    %cst_16 = arith.constant dense<0.000000e+00> : vector<8x64xf32>
    %25 = tpu.matmul %23, %24, %cst_16 {dimension_numbers = #tpu.dot_dimension_numbers<[1], [0], [0], [1], [0, 0, 1, 1], [], []>} : vector<8x128xbf16>, vector<128x64xbf16>, vector<8x64xf32> -> vector<8x64xf32>
    %c0_17 = arith.constant 0 : index
    %c0_18 = arith.constant 0 : index
    %26 = vector.load %arg8[%c0_17, %c0_18] : memref<1x64xf32, #tpu.memory_space<vmem>>, vector<1x64xf32>
    %27 = vector.broadcast %26 : vector<1x64xf32> to vector<8x64xf32>
    %28 = arith.addf %25, %27 : vector<8x64xf32>
    %cst_19 = arith.constant 0.000000e+00 : f32
    %29 = vector.broadcast %cst_19 : f32 to vector<8x64xf32>
    %30 = arith.maximumf %28, %29 : vector<8x64xf32>
    %31 = arith.truncf %30 : vector<8x64xf32> to vector<8x64xbf16>
    %c0_20 = arith.constant 0 : index
    %c0_21 = arith.constant 0 : index
    %32 = vector.load %arg9[%c0_20, %c0_21] : memref<64x128xbf16, #tpu.memory_space<vmem>>, vector<64x128xbf16>
    %cst_22 = arith.constant dense<0.000000e+00> : vector<8x128xf32>
    %33 = tpu.matmul %31, %32, %cst_22 {dimension_numbers = #tpu.dot_dimension_numbers<[1], [0], [0], [1], [0, 0, 1, 1], [], []>} : vector<8x64xbf16>, vector<64x128xbf16>, vector<8x128xf32> -> vector<8x128xf32>
    %c0_23 = arith.constant 0 : index
    %c0_24 = arith.constant 0 : index
    %34 = vector.load %arg10[%c0_23, %c0_24] : memref<1x128xf32, #tpu.memory_space<vmem>>, vector<1x128xf32>
    %35 = vector.broadcast %34 : vector<1x128xf32> to vector<8x128xf32>
    %36 = arith.addf %33, %35 : vector<8x128xf32>
    %cst_25 = arith.constant 5.000000e-01 : f32
    %37 = vector.broadcast %cst_25 : f32 to vector<8x128xf32>
    %38 = arith.mulf %37, %36 : vector<8x128xf32>
    %39 = math.tanh %38 : vector<8x128xf32>
    %cst_26 = arith.constant 5.000000e-01 : f32
    %40 = vector.broadcast %cst_26 : f32 to vector<8x128xf32>
    %41 = arith.mulf %40, %39 : vector<8x128xf32>
    %cst_27 = arith.constant 5.000000e-01 : f32
    %42 = vector.broadcast %cst_27 : f32 to vector<8x128xf32>
    %43 = arith.addf %41, %42 : vector<8x128xf32>
    %c0_28 = arith.constant 0 : index
    %c0_29 = arith.constant 0 : index
    %44 = vector.load %arg11[%c0_28, %c0_29] : memref<8x128xf32, #tpu.memory_space<vmem>>, vector<8x128xf32>
    tpu.vector_store %arg11[%c0_28, %c0_29], %43 {strides = array<i32>} : memref<8x128xf32, #tpu.memory_space<vmem>>, vector<8x128xf32>,
    %c0_30 = arith.constant 0 : index
    %c0_31 = arith.constant 0 : index
    %45 = vector.load %arg12[%c0_30, %c0_31] : memref<8x256xf32, #tpu.memory_space<vmem>>, vector<8x256xf32>
    tpu.vector_store %arg12[%c0_30, %c0_31], %14 {strides = array<i32>} : memref<8x256xf32, #tpu.memory_space<vmem>>, vector<8x256xf32>,
    return
  }
  func.func @transform_0(%arg0: i32) -> (i32, i32) {
    %c0_i32 = arith.constant 0 : i32
    %c0_i32_0 = arith.constant 0 : i32
    return %arg0, %c0_i32 : i32, i32
  }
  func.func @transform_1(%arg0: i32) -> (i32, i32) {
    %c0_i32 = arith.constant 0 : i32
    %c0_i32_0 = arith.constant 0 : i32
    return %arg0, %c0_i32 : i32, i32
  }
  func.func @transform_2(%arg0: i32) -> (i32, i32) {
    %c0_i32 = arith.constant 0 : i32
    %c0_i32_0 = arith.constant 0 : i32
    %c0_i32_1 = arith.constant 0 : i32
    return %c0_i32, %c0_i32_0 : i32, i32
  }
  func.func @transform_3(%arg0: i32) -> (i32, i32) {
    %c0_i32 = arith.constant 0 : i32
    %c0_i32_0 = arith.constant 0 : i32
    %c0_i32_1 = arith.constant 0 : i32
    return %c0_i32, %c0_i32_0 : i32, i32
  }
  func.func @transform_4(%arg0: i32) -> (i32, i32) {
    %c0_i32 = arith.constant 0 : i32
    %c0_i32_0 = arith.constant 0 : i32
    %c0_i32_1 = arith.constant 0 : i32
    return %c0_i32, %c0_i32_0 : i32, i32
  }
  func.func @transform_5(%arg0: i32) -> (i32, i32) {
    %c0_i32 = arith.constant 0 : i32
    %c0_i32_0 = arith.constant 0 : i32
    %c0_i32_1 = arith.constant 0 : i32
    return %c0_i32, %c0_i32_0 : i32, i32
  }
  func.func @transform_6(%arg0: i32) -> (i32, i32) {
    %c0_i32 = arith.constant 0 : i32
    %c0_i32_0 = arith.constant 0 : i32
    %c0_i32_1 = arith.constant 0 : i32
    return %c0_i32, %c0_i32_0 : i32, i32
  }
  func.func @transform_7(%arg0: i32) -> (i32, i32) {
    %c0_i32 = arith.constant 0 : i32
    %c0_i32_0 = arith.constant 0 : i32
    %c0_i32_1 = arith.constant 0 : i32
    return %c0_i32, %c0_i32_0 : i32, i32
  }
  func.func @transform_8(%arg0: i32) -> (i32, i32) {
    %c0_i32 = arith.constant 0 : i32
    %c0_i32_0 = arith.constant 0 : i32
    %c0_i32_1 = arith.constant 0 : i32
    return %c0_i32, %c0_i32_0 : i32, i32
  }
  func.func @transform_9(%arg0: i32) -> (i32, i32) {
    %c0_i32 = arith.constant 0 : i32
    %c0_i32_0 = arith.constant 0 : i32
    %c0_i32_1 = arith.constant 0 : i32
    return %c0_i32, %c0_i32_0 : i32, i32
  }
  func.func @transform_10(%arg0: i32) -> (i32, i32) {
    %c0_i32 = arith.constant 0 : i32
    %c0_i32_0 = arith.constant 0 : i32
    return %arg0, %c0_i32 : i32, i32
  }
  func.func @transform_11(%arg0: i32) -> (i32, i32) {
    %c0_i32 = arith.constant 0 : i32
    %c0_i32_0 = arith.constant 0 : i32
    return %arg0, %c0_i32 : i32, i32
  }
}

</mosaic_0001>

<bundles_post_ra>
// kernel: tpu_custom_call.1
= control target key start
LH: loop header
LB: loop body
LE: loop exit
PB: predicated region body
PF: predicated region fallthrough
CT: control target
= control target key end

     0   :  { %17 = vsyncpa [#allocation3], 0  ;;  %v694_v1 = vmov 0.0   ;;  %vm695_vm0 = vmmov 0   ;;  %s913_s0 = inlined_call_operand.vmem [shape: f32[8,128], index: 0, kind: input, shape index: {}]   ;;  %s914_s1 = inlined_call_operand.vmem [shape: f32[8,128], index: 1, kind: input, shape index: {}]   ;;  %s915_s2 = inlined_call_operand.vmem [shape: bf16[128,64], index: 2, kind: input, shape index: {}]   ;;  %s916_s3 = inlined_call_operand.vmem [shape: f32[1,64], index: 3, kind: input, shape index: {}]   ;;  %s917_s4 = inlined_call_operand.vmem [shape: bf16[64,256], index: 4, kind: input, shape index: {}]   ;;  %s918_s5 = inlined_call_operand.vmem [shape: f32[1,256], index: 5, kind: input, shape index: {}]   ;;  %s919_s6 = inlined_call_operand.vmem [shape: bf16[128,64], index: 6, kind: input, shape index: {}]   ;;  %s920_s7 = inlined_call_operand.vmem [shape: f32[1,64], index: 7, kind: input, shape index: {}]   ;;  %s921_s8 = inlined_call_operand.vmem [shape: bf16[64,128], index: 8, kind: input, shape index: {}]   ;;  %s922_s9 = inlined_call_operand.vmem [shape: f32[1,128], index: 9, kind: input, shape index: {}]   ;;  %s923_s10 = inlined_call_operand.hbm [shape: f32[8,128], index: 10, kind: output, shape index: {0}]   ;;  %s924_s11 = inlined_call_operand.hbm [shape: f32[8,256], index: 11, kind: output, shape index: {1}]  }
   0x1   :  { %v610_v0 = vld [vmem:[%s915_s2] sm:$0xff]   ;;  %553 = vmatprep.subr.bf16.mxu0 %v694_v1  ;;  %v611_v2 = vld [vmem:[%s915_s2 + $0x8] sm:$0xff]   ;;  %569 = vmatprep.mubr.msk.bf16.mxu0 %vm695_vm0, %v694_v1  ;;  %v612_v3 = vld [vmem:[%s915_s2 + $0x10] sm:$0xff]  }
   0x2   :  { %554 = vmatpush3.bf16.msra.mxu0 %v610_v0  ;;  %v618_v4 = vld [vmem:[%s917_s4 + $0x4] ss:$8 sps:$4 sm:$0xff]   ;;  %v620_v5 = vld [vmem:[%s917_s4] ss:$8 sps:$4 sm:$0xff]   ;;  %v613_v6 = vld [vmem:[%s915_s2 + $0x18] sm:$0xff]  }
   0x3   :  { %555 = vmatprep.subr.bf16.mxu0 %v694_v1  ;;  %v621_v7 = vld [vmem:[%s917_s4 + $0x14] ss:$8 sps:$4 sm:$0xff]   ;;  %219 = vmatprep.subr.bf16.mxu1 %v618_v4  ;;  %v623_v8 = vld [vmem:[%s917_s4 + $0x10] ss:$8 sps:$4 sm:$0xff]   ;;  %v614_v9 = vld [vmem:[%s915_s2 + $0x20] sm:$0xff]  }
   0x4   :  { %220 = vmatpush1.bf16.msra.mxu1 %v620_v5  ;;  %v624_v10 = vld [vmem:[%s917_s4 + $0x24] ss:$8 sps:$4 sm:$0xff]  }
   0x5   :  { %221 = vmatprep.subr.bf16.mxu1 %v621_v7  ;;  %v615_v11 = vld [vmem:[%s915_s2 + $0x28] sm:$0xff]  }
   0x6   :  { %556 = vmatpush3.bf16.msra.mxu0 %v611_v2 }
   0x7   :  { %557 = vmatprep.subr.bf16.mxu0 %v694_v1 }
   0x8   :  { %222 = vmatpush1.bf16.msra.mxu1 %v623_v8 }
   0x9   :  { %223 = vmatprep.subr.bf16.mxu1 %v624_v10 }
   0xa   :  { %558 = vmatpush3.bf16.msra.mxu0 %v612_v3 }
   0xb   :  { %559 = vmatprep.subr.bf16.mxu0 %v694_v1 }
   0xe   :  { %560 = vmatpush3.bf16.msra.mxu0 %v613_v6 }
   0xf   :  { %561 = vmatprep.subr.bf16.mxu0 %v694_v1 }
  0x12   :  { %562 = vmatpush3.bf16.msra.mxu0 %v614_v9 }
  0x13   :  { %563 = vmatprep.subr.bf16.mxu0 %v694_v1 }
  0x14   :  { %18 = vsyncpa [#allocation5], 0  ;;  %v616_v12 = vld [vmem:[%s915_s2 + $0x30] sm:$0xff]   ;;  %v617_v13 = vld [vmem:[%s915_s2 + $0x38] sm:$0xff]   ;;  %v696_v19 = vmov 0   ;;  %vm215_vm1 = vcmask 523264   ;;  %v165_v38 = vlaneseq }
  0x15   :  { %v40_v14 = vld [vmem:[%s913_s0] sm:$0xff]  ;;  %v627_v17 = vld [vmem:[%s917_s4 + $0x34] ss:$8 sps:$4 sm:$0xff]   ;;  %v629_v18 = vld [vmem:[%s917_s4 + $0x30] ss:$8 sps:$4 sm:$0xff]   ;;  %251 = vmatprep.mubr.bf16.mxu1 %v696_v19 }
  0x16   :  { %564 = vmatpush3.bf16.msra.mxu0 %v615_v11  ;;  %v41_v15 = vpack.c.bf16 %v40_v14, %v40_v14  ;;  %v626_v16 = vld [vmem:[%s917_s4 + $0x20] ss:$8 sps:$4 sm:$0xff]   ;;  %v632_v30 = vld [vmem:[%s919_s6 + $0x10] sm:$0xff]   ;;  %v633_v31 = vld [vmem:[%s919_s6 + $0x18] sm:$0xff]   ;;  %v166_v39 = vshrl.u32 %v165_v38, 7 }
  0x17   :  { %565 = vmatprep.subr.bf16.mxu0 %v694_v1  ;;  %224 = vmatpush1.bf16.msra.mxu1 %v626_v16  ;;  %v497_v20 = vld [vmem:[%s916_s3] ss:$0 sm:$0xff]  ;;  %v631_v29 = vld [vmem:[%s919_s6 + $0x8] sm:$0xff]   ;;  %v636_v34 = vld [vmem:[%s919_s6 + $0x30] sm:$0xff]  }
  0x18   :  { %225 = vmatprep.subr.bf16.mxu1 %v627_v17  ;;  %v630_v27 = vld [vmem:[%s919_s6] sm:$0xff]   ;;  %v635_v33 = vld [vmem:[%s919_s6 + $0x28] sm:$0xff]   ;;  %v637_v35 = vld [vmem:[%s919_s6 + $0x38] sm:$0xff]   ;;  %v167_v40 = vsub.s32 0, %v166_v39  ;;  %v171_v42 = vsub.s32 1, %v166_v39 }
  0x19   :  { %v634_v32 = vld [vmem:[%s919_s6 + $0x20] sm:$0xff]   ;;  %v639_v37 = vld [vmem:[%s921_s8 + $0x8] sm:$0xff]   ;;  %v640_v58 = vld [vmem:[%s921_s8 + $0x10] sm:$0xff]  }
  0x1a   :  { %566 = vmatpush3.bf16.msra.mxu0 %v616_v12  ;;  %v638_v36 = vld [vmem:[%s921_s8] sm:$0xff]   ;;  %v641_v59 = vld [vmem:[%s921_s8 + $0x18] sm:$0xff]  }
  0x1b   :  { %567 = vmatprep.subr.bf16.mxu0 %v694_v1  ;;  %226 = vmatpush1.bf16.msra.mxu1 %v629_v18  ;;  %v163_v41 = vld [vmem:[%s918_s5] sm:$0x3] }
  0x1c   :  { %573 = vmatprep.subr.bf16.mxu1 %v694_v1  ;;  %v168_v43 = vrot.slane %v163_v41, %v167_v40  ;;  %v172_v44 = vrot.slane %v163_v41, %v171_v42  ;;  %v260_v53 = vld [vmem:[%s914_s1] sm:$0xff]  ;;  %s697_s1 = smov [#allocation4]  }
  0x1d   :  { %v515_v60 = vld [vmem:[%s920_s7] ss:$0 sm:$0xff]  ;;  %s485_s16 = sshll.u32 %s697_s1, 4  ;;  %s486_s16 = int_to_ptr.vmem [resolvable:$true] %s485_s16 }
  0x1e   :  { %568 = vmatpush3.bf16.msra.mxu0 %v617_v13  ;;  %s646_s17 = scalar_lea.vmem %s486_s16, 256  ;;  %p651_p1 = scmp.lt.s32.totalorder %s486_s16, %s486_s16 }
  0x1f   :  { %593 = vmatprep.subr.bf16.mxu0 %v694_v1  ;;  %p647_p0 = scmp.ne.s32.totalorder %s486_s16, %s646_s17  ;;  %p652_p2 = scmp.lt.s32.totalorder %s646_s17, %s646_s17 }
  0x21   :  { %570 = vmatmul.mubr.bf16.vlgmr.msra.gmra.mrb[0].mxu0 %v41_v15  ;;  %p653_p3 = por %p652_p2, %p651_p1 }
  0x22   :  { %601 = vmatprep.mubr.msk.bf16.mxu0 %vm695_vm0, %v694_v1  ;;  %594 = vmatpush3.bf16.msra.mxu0 %v638_v36 }
  0x23   :  { %595 = vmatprep.subr.bf16.mxu0 %v694_v1  ;;  %p654_p4 = pnand %p653_p3, %p647_p0 }
  0x26   :  { %596 = vmatpush3.bf16.msra.mxu0 %v639_v37 }
  0x27   :  { %597 = vmatprep.subr.bf16.mxu0 %v694_v1 }
  0x2a   :  { %598 = vmatpush3.bf16.msra.mxu0 %v640_v58 }
  0x2b   :  { %599 = vmatprep.subr.bf16.mxu0 %v694_v1 }
  0x2e   :  { %600 = vmatpush3.bf16.msra.mxu0 %v641_v59 }
  0xf4   :  { %v147_v21 = vpop.f32.mrb[0].mxu0 }
  0xf5   :  { %v148_v22 = vadd.f32 %v497_v20, %v147_v21  ;;  %v571_v23 = vpop.f32.mrb[1].mxu0 }
  0xf6   :  { %v150_v24 = vpop.f32.mrb[2].mxu0 }
  0xf7   :  { %v153_v25 = vmax.f32 %v148_v22, 0.0  ;;  %v572_v26 = vpop.f32.mrb[3].mxu0 }
  0xf9   :  { %v154_v28 = vpack.c.bf16 %v153_v25, %v153_v25 }
  0xfb   :  { %514 = vmatmul.mubr.msk.bf16.vlgmr.msra.gmra.mrb[0].mxu1 %vm215_vm1, %v154_v28 }
  0xfc   :  { %574 = vmatpush3.bf16.msra.mxu1 %v630_v27  ;;  %589 = vmatprep.mubr.msk.bf16.mxu1 %vm695_vm0, %v694_v1 }
  0xfd   :  { %575 = vmatprep.subr.bf16.mxu1 %v694_v1 }
 0x100   :  { %576 = vmatpush3.bf16.msra.mxu1 %v631_v29 }
 0x101   :  { %577 = vmatprep.subr.bf16.mxu1 %v694_v1 }
 0x104   :  { %578 = vmatpush3.bf16.msra.mxu1 %v632_v30 }
 0x105   :  { %579 = vmatprep.subr.bf16.mxu1 %v694_v1 }
 0x108   :  { %580 = vmatpush3.bf16.msra.mxu1 %v633_v31 }
 0x109   :  { %581 = vmatprep.subr.bf16.mxu1 %v694_v1 }
 0x10c   :  { %582 = vmatpush3.bf16.msra.mxu1 %v634_v32 }
 0x10d   :  { %583 = vmatprep.subr.bf16.mxu1 %v694_v1 }
 0x110   :  { %584 = vmatpush3.bf16.msra.mxu1 %v635_v33 }
 0x111   :  { %585 = vmatprep.subr.bf16.mxu1 %v694_v1 }
 0x114   :  { %586 = vmatpush3.bf16.msra.mxu1 %v636_v34 }
 0x115   :  { %587 = vmatprep.subr.bf16.mxu1 %v694_v1 }
 0x118   :  { %588 = vmatpush3.bf16.msra.mxu1 %v637_v35 }
 0x1ce   :  { %v253_v45 = vpop.f32.mrb[0].mxu1 }
 0x1cf   :  { %v254_v46 = vadd.f32 %v253_v45, %v168_v43  ;;  %v255_v47 = vpop.f32.mrb[1].mxu1 }
 0x1d0   :  { %v256_v48 = vadd.f32 %v255_v47, %v172_v44  ;;  %v257_v49 = vpop.f32.mrb[2].mxu1 }
 0x1d1   :  { %467 = vst [vmem:[#allocation4] sm:$0xff] %v254_v46  ;;  %v258_v50 = vpop.f32.mrb[3].mxu1 }
 0x1d2   :  { %v261_v51 = vmul.f32 0.5, %v256_v48  ;;  %468 = vst [vmem:[#allocation4 + $0x8] sm:$0xff] %v256_v48 }
 0x1d4   :  { %v262_v52 = vmul.f32 1.442695, %v261_v51 }
 0x1d6   :  { %642 = vpow2.f32 %v262_v52 }
 0x1e0   :  { %v643_v54 = vpop.eup %642 }
 0x1e1   :  { %v264_v55 = vmul.f32 %v643_v54, %v260_v53 }
 0x1e3   :  { %v265_v56 = vadd.f32 %v264_v55, %v254_v46 }
 0x1e5   :  { %v266_v57 = vpack.c.bf16 %v265_v56, %v265_v56 }
 0x1e7   :  { %590 = vmatmul.mubr.bf16.vlgmr.msra.gmra.mrb[4].mxu1 %v266_v57 }
 0x2ba   :  { %v372_v61 = vpop.f32.mrb[4].mxu1 }
 0x2bb   :  { %v373_v62 = vadd.f32 %v515_v60, %v372_v61  ;;  %v591_v63 = vpop.f32.mrb[5].mxu1 }
 0x2bc   :  { %v375_v0 = vpop.f32.mrb[6].mxu1 }
 0x2bd   :  { %v378_v2 = vmax.f32 %v373_v62, 0.0  ;;  %v592_v3 = vpop.f32.mrb[7].mxu1 }
 0x2bf   :  { %v379_v4 = vpack.c.bf16 %v378_v2, %v378_v2 }
 0x2c1   :  { %602 = vmatmul.mubr.msk.bf16.vlgmr.msra.gmra.mrb[4].mxu0 %vm215_vm1, %v379_v4 }
 0x2c2   :  { %657 = shalt.err (!%p654_p4)
}
 0x2c3   :  { %s658_s18 = scalar_lea.hbm %s924_s11, 256 }
 0x2c4   :  { %p659_p5 = scmp.ne.s32.totalorder %s924_s11, %s658_s18  ;;  %p662_p6 = scmp.lt.u32.totalorder %s658_s18, %s924_s11 }
 0x2c6   :  { %p664_p7 = pnand %p662_p6, %p659_p5 }
 0x2c8   :  { %667 = shalt.err (!%p664_p7)
}
 0x2c9   :  { %488 = dma.vmem_to_hbm [thread:$0]  %s486_s16, 256, %s924_s11, [#allocation5]   ;;  %v524_v1 = vld [vmem:[%s922_s9] ss:$0 sm:$0xff] }
 0x2ca   :  { %s698_s27 = smov [#allocation2]  }
 0x2cb   :  { %s475_s2 = sshll.u32 %s698_s27, 4  ;;  %s476_s2 = int_to_ptr.vmem [resolvable:$true] %s475_s2 }
 0x2cc   :  { %s668_s28 = scalar_lea.vmem %s476_s2, 128  ;;  %p673_p9 = scmp.lt.s32.totalorder %s476_s2, %s476_s2 }
 0x2cd   :  { %p669_p8 = scmp.ne.s32.totalorder %s476_s2, %s668_s28  ;;  %p674_p10 = scmp.lt.s32.totalorder %s668_s28, %s668_s28 }
 0x2cf   :  { %p675_p11 = por %p674_p10, %p673_p9 }
 0x2d1   :  { %p676_p12 = pnand %p675_p11, %p669_p8 }
 0x394   :  { %v456_v5 = vpop.f32.mrb[4].mxu0 }
 0x395   :  { %v457_v6 = vadd.f32 %v524_v1, %v456_v5  ;;  %v603_v7 = vpop.f32.mrb[5].mxu0 }
 0x396   :  { %v459_v8 = vpop.f32.mrb[6].mxu0 }
 0x397   :  { %v462_v9 = vmul.f32 0.5, %v457_v6  ;;  %v604_v10 = vpop.f32.mrb[7].mxu0 }
 0x399   :  { %644 = vtanh.f32 %v462_v9 }
 0x3a3   :  { %v645_v11 = vpop.eup %644 }
 0x3a4   :  { %v464_v12 = vmul.f32 0.5, %v645_v11 }
 0x3a6   :  { %v465_v13 = vadd.f32 0.5, %v464_v12 }
 0x3a8   :  { %466 = vst [vmem:[#allocation2] sm:$0xff] %v465_v13 }
 0x3a9   :  { %679 = shalt.err (!%p676_p12)
}
 0x3aa   :  { %s680_s0 = scalar_lea.hbm %s923_s10, 128 }
 0x3ab   :  { %p681_p13 = scmp.ne.s32.totalorder %s923_s10, %s680_s0  ;;  %p684_p0 = scmp.lt.u32.totalorder %s680_s0, %s923_s10 }
 0x3ad   :  { %p686_p1 = pnand %p684_p0, %p681_p13 }
 0x3af   :  { %689 = shalt.err (!%p686_p1)
}
 0x3b0   :  { %478 = dma.vmem_to_hbm [thread:$0]  %s476_s2, 128, %s923_s10, [#allocation3]  }
 0x3b1   :  { %690 = dma.done.wait [#allocation3], 128  }
 0x3b2   :  { %691 = vsyncadd [#allocation3], 4294967168 }
 0x3b3   :  { %692 = dma.done.wait [#allocation5], 256  }
 0x3b4   :  { %693 = vsyncadd [#allocation5], 4294967040 }
 0x3b5   :  { %495 = vsyncpa [#allocation3], 1 }
 0x3b6   :  { %496 = vsyncpa [#allocation5], 1 }

// kernel: tpu_custom_call.1
= control target key start
LH: loop header
LB: loop body
LE: loop exit
PB: predicated region body
PF: predicated region fallthrough
CT: control target
= control target key end

     0   :  { %17 = vsyncpa [#allocation3], 0  ;;  %v694_v1 = vmov 0.0   ;;  %vm695_vm0 = vmmov 0   ;;  %s913_s0 = inlined_call_operand.vmem [shape: f32[8,128], index: 0, kind: input, shape index: {}]   ;;  %s914_s1 = inlined_call_operand.vmem [shape: f32[8,128], index: 1, kind: input, shape index: {}]   ;;  %s915_s2 = inlined_call_operand.vmem [shape: bf16[128,64], index: 2, kind: input, shape index: {}]   ;;  %s916_s3 = inlined_call_operand.vmem [shape: f32[1,64], index: 3, kind: input, shape index: {}]   ;;  %s917_s4 = inlined_call_operand.vmem [shape: bf16[64,256], index: 4, kind: input, shape index: {}]   ;;  %s918_s5 = inlined_call_operand.vmem [shape: f32[1,256], index: 5, kind: input, shape index: {}]   ;;  %s919_s6 = inlined_call_operand.vmem [shape: bf16[128,64], index: 6, kind: input, shape index: {}]   ;;  %s920_s7 = inlined_call_operand.vmem [shape: f32[1,64], index: 7, kind: input, shape index: {}]   ;;  %s921_s8 = inlined_call_operand.vmem [shape: bf16[64,128], index: 8, kind: input, shape index: {}]   ;;  %s922_s9 = inlined_call_operand.vmem [shape: f32[1,128], index: 9, kind: input, shape index: {}]   ;;  %s923_s10 = inlined_call_operand.hbm [shape: f32[8,128], index: 10, kind: output, shape index: {0}]   ;;  %s924_s11 = inlined_call_operand.hbm [shape: f32[8,256], index: 11, kind: output, shape index: {1}]  }
   0x1   :  { %v610_v0 = vld [vmem:[%s915_s2] sm:$0xff]   ;;  %553 = vmatprep.subr.bf16.mxu0 %v694_v1  ;;  %v611_v2 = vld [vmem:[%s915_s2 + $0x8] sm:$0xff]   ;;  %569 = vmatprep.mubr.msk.bf16.mxu0 %vm695_vm0, %v694_v1  ;;  %v612_v3 = vld [vmem:[%s915_s2 + $0x10] sm:$0xff]  }
   0x2   :  { %554 = vmatpush3.bf16.msra.mxu0 %v610_v0  ;;  %v618_v4 = vld [vmem:[%s917_s4 + $0x4] ss:$8 sps:$4 sm:$0xff]   ;;  %v620_v5 = vld [vmem:[%s917_s4] ss:$8 sps:$4 sm:$0xff]   ;;  %v613_v6 = vld [vmem:[%s915_s2 + $0x18] sm:$0xff]  }
   0x3   :  { %555 = vmatprep.subr.bf16.mxu0 %v694_v1  ;;  %v621_v7 = vld [vmem:[%s917_s4 + $0x14] ss:$8 sps:$4 sm:$0xff]   ;;  %219 = vmatprep.subr.bf16.mxu1 %v618_v4  ;;  %v623_v8 = vld [vmem:[%s917_s4 + $0x10] ss:$8 sps:$4 sm:$0xff]   ;;  %v614_v9 = vld [vmem:[%s915_s2 + $0x20] sm:$0xff]  }
   0x4   :  { %220 = vmatpush1.bf16.msra.mxu1 %v620_v5  ;;  %v624_v10 = vld [vmem:[%s917_s4 + $0x24] ss:$8 sps:$4 sm:$0xff]  }
   0x5   :  { %221 = vmatprep.subr.bf16.mxu1 %v621_v7  ;;  %v615_v11 = vld [vmem:[%s915_s2 + $0x28] sm:$0xff]  }
   0x6   :  { %556 = vmatpush3.bf16.msra.mxu0 %v611_v2 }
   0x7   :  { %557 = vmatprep.subr.bf16.mxu0 %v694_v1 }
   0x8   :  { %222 = vmatpush1.bf16.msra.mxu1 %v623_v8 }
   0x9   :  { %223 = vmatprep.subr.bf16.mxu1 %v624_v10 }
   0xa   :  { %558 = vmatpush3.bf16.msra.mxu0 %v612_v3 }
   0xb   :  { %559 = vmatprep.subr.bf16.mxu0 %v694_v1 }
   0xe   :  { %560 = vmatpush3.bf16.msra.mxu0 %v613_v6 }
   0xf   :  { %561 = vmatprep.subr.bf16.mxu0 %v694_v1 }
  0x12   :  { %562 = vmatpush3.bf16.msra.mxu0 %v614_v9 }
  0x13   :  { %563 = vmatprep.subr.bf16.mxu0 %v694_v1 }
  0x14   :  { %18 = vsyncpa [#allocation5], 0  ;;  %v616_v12 = vld [vmem:[%s915_s2 + $0x30] sm:$0xff]   ;;  %v617_v13 = vld [vmem:[%s915_s2 + $0x38] sm:$0xff]   ;;  %v696_v19 = vmov 0   ;;  %vm215_vm1 = vcmask 523264   ;;  %v165_v38 = vlaneseq }
  0x15   :  { %v40_v14 = vld [vmem:[%s913_s0] sm:$0xff]  ;;  %v627_v17 = vld [vmem:[%s917_s4 + $0x34] ss:$8 sps:$4 sm:$0xff]   ;;  %v629_v18 = vld [vmem:[%s917_s4 + $0x30] ss:$8 sps:$4 sm:$0xff]   ;;  %251 = vmatprep.mubr.bf16.mxu1 %v696_v19 }
  0x16   :  { %564 = vmatpush3.bf16.msra.mxu0 %v615_v11  ;;  %v41_v15 = vpack.c.bf16 %v40_v14, %v40_v14  ;;  %v626_v16 = vld [vmem:[%s917_s4 + $0x20] ss:$8 sps:$4 sm:$0xff]   ;;  %v632_v30 = vld [vmem:[%s919_s6 + $0x10] sm:$0xff]   ;;  %v633_v31 = vld [vmem:[%s919_s6 + $0x18] sm:$0xff]   ;;  %v166_v39 = vshrl.u32 %v165_v38, 7 }
  0x17   :  { %565 = vmatprep.subr.bf16.mxu0 %v694_v1  ;;  %224 = vmatpush1.bf16.msra.mxu1 %v626_v16  ;;  %v497_v20 = vld [vmem:[%s916_s3] ss:$0 sm:$0xff]  ;;  %v631_v29 = vld [vmem:[%s919_s6 + $0x8] sm:$0xff]   ;;  %v636_v34 = vld [vmem:[%s919_s6 + $0x30] sm:$0xff]  }
  0x18   :  { %225 = vmatprep.subr.bf16.mxu1 %v627_v17  ;;  %v630_v27 = vld [vmem:[%s919_s6] sm:$0xff]   ;;  %v635_v33 = vld [vmem:[%s919_s6 + $0x28] sm:$0xff]   ;;  %v637_v35 = vld [vmem:[%s919_s6 + $0x38] sm:$0xff]   ;;  %v167_v40 = vsub.s32 0, %v166_v39  ;;  %v171_v42 = vsub.s32 1, %v166_v39 }
  0x19   :  { %v634_v32 = vld [vmem:[%s919_s6 + $0x20] sm:$0xff]   ;;  %v639_v37 = vld [vmem:[%s921_s8 + $0x8] sm:$0xff]   ;;  %v640_v58 = vld [vmem:[%s921_s8 + $0x10] sm:$0xff]  }
  0x1a   :  { %566 = vmatpush3.bf16.msra.mxu0 %v616_v12  ;;  %v638_v36 = vld [vmem:[%s921_s8] sm:$0xff]   ;;  %v641_v59 = vld [vmem:[%s921_s8 + $0x18] sm:$0xff]  }
  0x1b   :  { %567 = vmatprep.subr.bf16.mxu0 %v694_v1  ;;  %226 = vmatpush1.bf16.msra.mxu1 %v629_v18  ;;  %v163_v41 = vld [vmem:[%s918_s5] sm:$0x3] }
  0x1c   :  { %573 = vmatprep.subr.bf16.mxu1 %v694_v1  ;;  %v168_v43 = vrot.slane %v163_v41, %v167_v40  ;;  %v172_v44 = vrot.slane %v163_v41, %v171_v42  ;;  %v260_v53 = vld [vmem:[%s914_s1] sm:$0xff]  ;;  %s697_s1 = smov [#allocation4]  }
  0x1d   :  { %v515_v60 = vld [vmem:[%s920_s7] ss:$0 sm:$0xff]  ;;  %s485_s16 = sshll.u32 %s697_s1, 4  ;;  %s486_s16 = int_to_ptr.vmem [resolvable:$true] %s485_s16 }
  0x1e   :  { %568 = vmatpush3.bf16.msra.mxu0 %v617_v13  ;;  %s646_s17 = scalar_lea.vmem %s486_s16, 256  ;;  %p651_p1 = scmp.lt.s32.totalorder %s486_s16, %s486_s16 }
  0x1f   :  { %593 = vmatprep.subr.bf16.mxu0 %v694_v1  ;;  %p647_p0 = scmp.ne.s32.totalorder %s486_s16, %s646_s17  ;;  %p652_p2 = scmp.lt.s32.totalorder %s646_s17, %s646_s17 }
  0x21   :  { %570 = vmatmul.mubr.bf16.vlgmr.msra.gmra.mrb[0].mxu0 %v41_v15  ;;  %p653_p3 = por %p652_p2, %p651_p1 }
  0x22   :  { %601 = vmatprep.mubr.msk.bf16.mxu0 %vm695_vm0, %v694_v1  ;;  %594 = vmatpush3.bf16.msra.mxu0 %v638_v36 }
  0x23   :  { %595 = vmatprep.subr.bf16.mxu0 %v694_v1  ;;  %p654_p4 = pnand %p653_p3, %p647_p0 }
  0x26   :  { %596 = vmatpush3.bf16.msra.mxu0 %v639_v37 }
  0x27   :  { %597 = vmatprep.subr.bf16.mxu0 %v694_v1 }
  0x2a   :  { %598 = vmatpush3.bf16.msra.mxu0 %v640_v58 }
  0x2b   :  { %599 = vmatprep.subr.bf16.mxu0 %v694_v1 }
  0x2e   :  { %600 = vmatpush3.bf16.msra.mxu0 %v641_v59 }
  0xf4   :  { %v147_v21 = vpop.f32.mrb[0].mxu0 }
  0xf5   :  { %v148_v22 = vadd.f32 %v497_v20, %v147_v21  ;;  %v571_v23 = vpop.f32.mrb[1].mxu0 }
  0xf6   :  { %v150_v24 = vpop.f32.mrb[2].mxu0 }
  0xf7   :  { %v153_v25 = vmax.f32 %v148_v22, 0.0  ;;  %v572_v26 = vpop.f32.mrb[3].mxu0 }
  0xf9   :  { %v154_v28 = vpack.c.bf16 %v153_v25, %v153_v25 }
  0xfb   :  { %514 = vmatmul.mubr.msk.bf16.vlgmr.msra.gmra.mrb[0].mxu1 %vm215_vm1, %v154_v28 }
  0xfc   :  { %574 = vmatpush3.bf16.msra.mxu1 %v630_v27  ;;  %589 = vmatprep.mubr.msk.bf16.mxu1 %vm695_vm0, %v694_v1 }
  0xfd   :  { %575 = vmatprep.subr.bf16.mxu1 %v694_v1 }
 0x100   :  { %576 = vmatpush3.bf16.msra.mxu1 %v631_v29 }
 0x101   :  { %577 = vmatprep.subr.bf16.mxu1 %v694_v1 }
 0x104   :  { %578 = vmatpush3.bf16.msra.mxu1 %v632_v30 }
 0x105   :  { %579 = vmatprep.subr.bf16.mxu1 %v694_v1 }
 0x108   :  { %580 = vmatpush3.bf16.msra.mxu1 %v633_v31 }
 0x109   :  { %581 = vmatprep.subr.bf16.mxu1 %v694_v1 }
 0x10c   :  { %582 = vmatpush3.bf16.msra.mxu1 %v634_v32 }
 0x10d   :  { %583 = vmatprep.subr.bf16.mxu1 %v694_v1 }
 0x110   :  { %584 = vmatpush3.bf16.msra.mxu1 %v635_v33 }
 0x111   :  { %585 = vmatprep.subr.bf16.mxu1 %v694_v1 }
 0x114   :  { %586 = vmatpush3.bf16.msra.mxu1 %v636_v34 }
 0x115   :  { %587 = vmatprep.subr.bf16.mxu1 %v694_v1 }
 0x118   :  { %588 = vmatpush3.bf16.msra.mxu1 %v637_v35 }
 0x1ce   :  { %v253_v45 = vpop.f32.mrb[0].mxu1 }
 0x1cf   :  { %v254_v46 = vadd.f32 %v253_v45, %v168_v43  ;;  %v255_v47 = vpop.f32.mrb[1].mxu1 }
 0x1d0   :  { %v256_v48 = vadd.f32 %v255_v47, %v172_v44  ;;  %v257_v49 = vpop.f32.mrb[2].mxu1 }
 0x1d1   :  { %467 = vst [vmem:[#allocation4] sm:$0xff] %v254_v46  ;;  %v258_v50 = vpop.f32.mrb[3].mxu1 }
 0x1d2   :  { %v261_v51 = vmul.f32 0.5, %v256_v48  ;;  %468 = vst [vmem:[#allocation4 + $0x8] sm:$0xff] %v256_v48 }
 0x1d4   :  { %v262_v52 = vmul.f32 1.442695, %v261_v51 }
 0x1d6   :  { %642 = vpow2.f32 %v262_v52 }
 0x1e0   :  { %v643_v54 = vpop.eup %642 }
 0x1e1   :  { %v264_v55 = vmul.f32 %v643_v54, %v260_v53 }
 0x1e3   :  { %v265_v56 = vadd.f32 %v264_v55, %v254_v46 }
 0x1e5   :  { %v266_v57 = vpack.c.bf16 %v265_v56, %v265_v56 }
 0x1e7   :  { %590 = vmatmul.mubr.bf16.vlgmr.msra.gmra.mrb[4].mxu1 %v266_v57 }
 0x2ba   :  { %v372_v61 = vpop.f32.mrb[4].mxu1 }
 0x2bb   :  { %v373_v62 = vadd.f32 %v515_v60, %v372_v61  ;;  %v591_v63 = vpop.f32.mrb[5].mxu1 }
 0x2bc   :  { %v375_v0 = vpop.f32.mrb[6].mxu1 }
 0x2bd   :  { %v378_v2 = vmax.f32 %v373_v62, 0.0  ;;  %v592_v3 = vpop.f32.mrb[7].mxu1 }
 0x2bf   :  { %v379_v4 = vpack.c.bf16 %v378_v2, %v378_v2 }
 0x2c1   :  { %602 = vmatmul.mubr.msk.bf16.vlgmr.msra.gmra.mrb[4].mxu0 %vm215_vm1, %v379_v4 }
 0x2c2   :  { %657 = shalt.err (!%p654_p4)
}
 0x2c3   :  { %s658_s18 = scalar_lea.hbm %s924_s11, 256 }
 0x2c4   :  { %p659_p5 = scmp.ne.s32.totalorder %s924_s11, %s658_s18  ;;  %p662_p6 = scmp.lt.u32.totalorder %s658_s18, %s924_s11 }
 0x2c6   :  { %p664_p7 = pnand %p662_p6, %p659_p5 }
 0x2c8   :  { %667 = shalt.err (!%p664_p7)
}
 0x2c9   :  { %488 = dma.vmem_to_hbm [thread:$0]  %s486_s16, 256, %s924_s11, [#allocation5]   ;;  %v524_v1 = vld [vmem:[%s922_s9] ss:$0 sm:$0xff] }
 0x2ca   :  { %s698_s27 = smov [#allocation2]  }
 0x2cb   :  { %s475_s2 = sshll.u32 %s698_s27, 4  ;;  %s476_s2 = int_to_ptr.vmem [resolvable:$true] %s475_s2 }
 0x2cc   :  { %s668_s28 = scalar_lea.vmem %s476_s2, 128  ;;  %p673_p9 = scmp.lt.s32.totalorder %s476_s2, %s476_s2 }
 0x2cd   :  { %p669_p8 = scmp.ne.s32.totalorder %s476_s2, %s668_s28  ;;  %p674_p10 = scmp.lt.s32.totalorder %s668_s28, %s668_s28 }
 0x2cf   :  { %p675_p11 = por %p674_p10, %p673_p9 }
 0x2d1   :  { %p676_p12 = pnand %p675_p11, %p669_p8 }
 0x394   :  { %v456_v5 = vpop.f32.mrb[4].mxu0 }
 0x395   :  { %v457_v6 = vadd.f32 %v524_v1, %v456_v5  ;;  %v603_v7 = vpop.f32.mrb[5].mxu0 }
 0x396   :  { %v459_v8 = vpop.f32.mrb[6].mxu0 }
 0x397   :  { %v462_v9 = vmul.f32 0.5, %v457_v6  ;;  %v604_v10 = vpop.f32.mrb[7].mxu0 }
 0x399   :  { %644 = vtanh.f32 %v462_v9 }
 0x3a3   :  { %v645_v11 = vpop.eup %644 }
 0x3a4   :  { %v464_v12 = vmul.f32 0.5, %v645_v11 }
 0x3a6   :  { %v465_v13 = vadd.f32 0.5, %v464_v12 }
 0x3a8   :  { %466 = vst [vmem:[#allocation2] sm:$0xff] %v465_v13 }
 0x3a9   :  { %679 = shalt.err (!%p676_p12)
}
 0x3aa   :  { %s680_s0 = scalar_lea.hbm %s923_s10, 128 }
 0x3ab   :  { %p681_p13 = scmp.ne.s32.totalorder %s923_s10, %s680_s0  ;;  %p684_p0 = scmp.lt.u32.totalorder %s680_s0, %s923_s10 }
 0x3ad   :  { %p686_p1 = pnand %p684_p0, %p681_p13 }
 0x3af   :  { %689 = shalt.err (!%p686_p1)
}
 0x3b0   :  { %478 = dma.vmem_to_hbm [thread:$0]  %s476_s2, 128, %s923_s10, [#allocation3]  }
 0x3b1   :  { %690 = dma.done.wait [#allocation3], 128  }
 0x3b2   :  { %691 = vsyncadd [#allocation3], 4294967168 }
 0x3b3   :  { %692 = dma.done.wait [#allocation5], 256  }
 0x3b4   :  { %693 = vsyncadd [#allocation5], 4294967040 }
 0x3b5   :  { %495 = vsyncpa [#allocation3], 1 }
 0x3b6   :  { %496 = vsyncpa [#allocation5], 1 }

</bundles_post_ra>
